<compile_context>
chip_gen: v7x
topology: tpu7x:2x2x1
jax: 0.10.0
libtpu: 0.0.40
codegen_flags: <defaults>
</compile_context>

<pallas_src>
import functools

import jax
import jax.numpy as jnp
from jax import lax
from jax.experimental import pallas as pl
from jax.experimental.pallas import tpu as pltpu

EPS = 1e-5


# ---------------------------------------------------------------------------
# generation-aware sizing helpers
# ---------------------------------------------------------------------------
def _tpu_vmem_bytes():
    """Physical VMEM per TensorCore; conservative fallback if unqueryable."""
    try:
        return int(pltpu.get_tpu_info().vmem_capacity_bytes)
    except Exception:
        return 64 << 20  # assume v7x-class (64 MiB) if we cannot tell


def _clamp_vmem(nbytes, phys):
    cap = phys // 2  # leave headroom for compiler scratch / second buffer set
    floor = min(16 << 20, cap)
    return int(min(max(nbytes, floor), cap))


def _proj_vmem_limit(C, thw, phys):
    f32, bf16 = 4, 2
    x_io = 2 * C * thw * f32                    # double-buffered f32 input tile
    out_io = 2 * 3 * C * thw * bf16             # double-buffered bf16 output tiles
    w = (2 * C * C + C * C) * bf16 + 3 * C * f32
    tmp = 4 * C * thw * f32                     # fg / h / casts (generous)
    return _clamp_vmem(int(1.5 * (x_io + out_io + w + tmp)), phys)


def _attn_vmem_limit(C, tq, tk, phys):
    f32, bf16 = 4, 2
    in_io = 2 * (C * tq * bf16 + 2 * C * tk * bf16 + C * tq * f32
                 + C * C * bf16 + C * f32)
    out_io = 2 * C * tq * f32
    scr = C * tq * f32 + 2 * tq * f32
    tmp = 3 * tk * tq * f32 + tk * tq * bf16 + 3 * C * tq * f32
    return _clamp_vmem(int(1.5 * (in_io + out_io + scr + tmp)), phys)


def _pick_hw_tile(hw_pad, phys):
    cap = 2048 if phys >= (96 << 20) else 1024
    for t in (cap, cap // 2, 512, 256, 128):
        if t <= hw_pad and hw_pad % t == 0:
            return t
    return 128


def _pick_attn_tiles(hw_pad, B, phys):
    big = phys >= (96 << 20)  # 128-MiB VMEM parts (v5e / v6e)
    tk_cands = (2048, 1024, 512, 256, 128) if big else (512, 256, 128)
    tk = next(t for t in tk_cands if t <= hw_pad and hw_pad % t == 0)
    tq = next(t for t in (512, 256, 128) if t <= hw_pad and hw_pad % t == 0)
    # dual-TensorCore parts: ensure B * n_q >= 2 whenever there is enough work
    if B * (hw_pad // tq) < 2:
        for t in (256, 128):
            if hw_pad % t == 0 and hw_pad // t >= 2:
                tq = t
                break
    return tq, tk


# ---------------------------------------------------------------------------
# Pass 1: fused (norm-folded) 1x1-conv projections, HW-tiled streaming matmul
# ---------------------------------------------------------------------------
def cam_proj_kernel(x_ref, wfg_ref, bfg_ref, wh_ref, bh_ref,
                    f_ref, g_ref, h_ref):
    xb = x_ref[0].astype(jnp.bfloat16)                 # (C, thw) bf16 MXU input
    c = xb.shape[0]

    # [Wf;Wg] has the instance-norm rsqrt(var) folded into its columns and the
    # mean folded into bfg (per batch), so it acts directly on raw x.
    fg = jnp.dot(wfg_ref[0], xb,
                 preferred_element_type=jnp.float32) + bfg_ref[0]   # (2C, thw)
    hh = jnp.dot(wh_ref[...], xb,
                 preferred_element_type=jnp.float32) + bh_ref[...]  # (C, thw)

    f_ref[0] = fg[:c].astype(jnp.bfloat16)
    g_ref[0] = fg[c:].astype(jnp.bfloat16)
    h_ref[0] = hh.astype(jnp.bfloat16)


# ---------------------------------------------------------------------------
# Pass 2: flash-style attention (lane-dense layout) + out_conv + residual
# ---------------------------------------------------------------------------
def cam_attn_kernel(f_ref, g_ref, h_ref, x_ref, wo_ref, bo_ref,
                    o_ref, m_ref, l_ref, acc_ref, *, hw_real, hw_pad):
    ki = pl.program_id(2)

    @pl.when(ki == 0)
    def _():
        m_ref[...] = jnp.full_like(m_ref, -jnp.inf)
        l_ref[...] = jnp.zeros_like(l_ref)
        acc_ref[...] = jnp.zeros_like(acc_ref)

    f_q = f_ref[0]                                     # (C, tq) bf16
    g_k = g_ref[0]                                     # (C, tk) bf16
    h_k = h_ref[0]                                     # (C, tk) bf16
    tk = g_k.shape[-1]

    # energy tile (lane-dense: spatial dims on lanes): e[k, q] = sum_c g*f
    e = lax.dot_general(g_k, f_q, (((0,), (0,)), ((), ())),
                        preferred_element_type=jnp.float32)         # (tk, tq)

    if hw_pad != hw_real:                              # mask padded key rows
        key_idx = ki * tk + lax.broadcasted_iota(jnp.int32, e.shape, 0)
        e = jnp.where(key_idx < hw_real, e, -jnp.inf)

    # online softmax over keys (axis 0), f32 math
    m_prev = m_ref[...]                                # (1, tq)
    m_new = jnp.maximum(m_prev, jnp.max(e, axis=0, keepdims=True))
    alpha = jnp.exp(m_prev - m_new)                    # (1, tq)
    p = jnp.exp(e - m_new)                             # (tk, tq)
    l_ref[...] = alpha * l_ref[...] + jnp.sum(p, axis=0, keepdims=True)

    # accumulate H @ P : (C, tk) x (tk, tq) -> (C, tq), lane-dense accumulator
    pv = jnp.dot(h_k, p.astype(jnp.bfloat16),
                 preferred_element_type=jnp.float32)
    acc_ref[...] = alpha * acc_ref[...] + pv
    m_ref[...] = m_new

    @pl.when(ki == pl.num_programs(2) - 1)
    def _():
        # epilogue runs once per q tile: exact reciprocal is effectively free
        inv_l = pl.reciprocal(l_ref[...], approx=False)              # (1, tq)
        out_q = acc_ref[...] * inv_l                                 # (C, tq)
        y = jnp.dot(wo_ref[...], out_q.astype(jnp.bfloat16),
                    preferred_element_type=jnp.float32)              # (C, tq)
        o_ref[0] = y + bo_ref[...] + x_ref[0]                        # + residual


# ---------------------------------------------------------------------------
# wrapper
# ---------------------------------------------------------------------------
def cam_forward(x_nchw, params, *, tq=None, tk=None):
    B, C, H, W = x_nchw.shape
    HW = H * W
    HW_pad = ((HW + 127) // 128) * 128
    phys = _tpu_vmem_bytes()

    x = x_nchw.reshape(B, C, HW).astype(jnp.float32)
    wf, bf, wg, bg, wh, bh, wo, bo = params

    # ---- fold instance norm into the f/g projection (O(B*C^2) work) ----
    mean = jnp.mean(x, axis=-1)                                    # (B, C)
    var = jnp.sum((x - mean[..., None]) ** 2, axis=-1) / max(HW - 1, 1)
    rstd = lax.rsqrt(var + EPS)                                    # (B, C)

    wfg = jnp.concatenate([wf, wg], axis=0)                        # (2C, C)
    bfg = jnp.concatenate([bf, bg], axis=0)                        # (2C, 1)
    wfg_eff = wfg[None] * rstd[:, None, :]                         # (B, 2C, C)
    wfg_bf = wfg_eff.astype(jnp.bfloat16)                          # MXU operand
    # compute folded bias with the *rounded* weights so the mean term cancels
    # exactly against what the bf16 matmul actually computes
    bfg_eff = bfg[None] - jnp.einsum(
        "boc,bc->bo", wfg_bf.astype(jnp.float32), mean)[..., None]  # (B, 2C, 1)
    wh_bf = wh.astype(jnp.bfloat16)
    wo_bf = wo.astype(jnp.bfloat16)

    # pad spatial dim up to a multiple of 128 (lane-dense tiles everywhere)
    x_p = x if HW_pad == HW else jnp.pad(x, ((0, 0), (0, 0), (0, HW_pad - HW)))

    # ---- pass 1: HW-tiled streaming projections ----
    thw = _pick_hw_tile(HW_pad, phys)
    n_hw = HW_pad // thw
    f, g, h = pl.pallas_call(
        cam_proj_kernel,
        out_shape=(
            jax.ShapeDtypeStruct((B, C, HW_pad), jnp.bfloat16),
            jax.ShapeDtypeStruct((B, C, HW_pad), jnp.bfloat16),
            jax.ShapeDtypeStruct((B, C, HW_pad), jnp.bfloat16),
        ),
        grid=(B, n_hw),
        in_specs=[
            pl.BlockSpec((1, C, thw), lambda b, t: (b, 0, t)),     # x tile
            pl.BlockSpec((1, 2 * C, C), lambda b, t: (b, 0, 0)),   # folded [Wf;Wg]
            pl.BlockSpec((1, 2 * C, 1), lambda b, t: (b, 0, 0)),   # folded bias
            pl.BlockSpec((C, C), lambda b, t: (0, 0)),             # Wh (bf16)
            pl.BlockSpec((C, 1), lambda b, t: (0, 0)),             # bh
        ],
        out_specs=[
            pl.BlockSpec((1, C, thw), lambda b, t: (b, 0, t)),
            pl.BlockSpec((1, C, thw), lambda b, t: (b, 0, t)),
            pl.BlockSpec((1, C, thw), lambda b, t: (b, 0, t)),
        ],
        compiler_params=pltpu.CompilerParams(
            dimension_semantics=("parallel", "parallel"),
            vmem_limit_bytes=_proj_vmem_limit(C, thw, phys),
        ),
    )(x_p, wfg_bf, bfg_eff, wh_bf, bh)

    # ---- pass 2: tiled online-softmax attention + out_conv + residual ----
    tq_auto, tk_auto = _pick_attn_tiles(HW_pad, B, phys)
    tq = tq_auto if tq is None else int(tq)
    tk = tk_auto if tk is None else int(tk)
    assert tq % 128 == 0 and tk % 128 == 0, "q/k tiles must be multiples of 128"
    assert HW_pad % tq == 0 and HW_pad % tk == 0, "q/k tiles must divide padded H*W"
    n_q, n_k = HW_pad // tq, HW_pad // tk

    attn_kernel = functools.partial(cam_attn_kernel, hw_real=HW, hw_pad=HW_pad)
    out = pl.pallas_call(
        attn_kernel,
        out_shape=jax.ShapeDtypeStruct((B, C, HW_pad), jnp.float32),
        grid=(B, n_q, n_k),
        in_specs=[
            pl.BlockSpec((1, C, tq), lambda b, qi, ki: (b, 0, qi)),   # f (query tile)
            pl.BlockSpec((1, C, tk), lambda b, qi, ki: (b, 0, ki)),   # g (key tile)
            pl.BlockSpec((1, C, tk), lambda b, qi, ki: (b, 0, ki)),   # h (key tile)
            pl.BlockSpec((1, C, tq), lambda b, qi, ki: (b, 0, qi)),   # x residual
            pl.BlockSpec((C, C), lambda b, qi, ki: (0, 0)),           # Wo (bf16)
            pl.BlockSpec((C, 1), lambda b, qi, ki: (0, 0)),           # bo
        ],
        out_specs=pl.BlockSpec((1, C, tq), lambda b, qi, ki: (b, 0, qi)),
        scratch_shapes=[
            pltpu.VMEM((1, tq), jnp.float32),      # running max   m
            pltpu.VMEM((1, tq), jnp.float32),      # running denom l
            pltpu.VMEM((C, tq), jnp.float32),      # lane-dense output accumulator
        ],
        compiler_params=pltpu.CompilerParams(
            dimension_semantics=("parallel", "parallel", "arbitrary"),
            vmem_limit_bytes=_attn_vmem_limit(C, tq, tk, phys),
        ),
    )(f, g, h, x_p, wo_bf, bo)

    return out[:, :, :HW].reshape(B, C, H, W)


# ---------------------------------------------------------------------------
# pure-JAX reference (f32) for sanity checking
# ---------------------------------------------------------------------------
def cam_reference(x_nchw, params):
    B, C, H, W = x_nchw.shape
    HW = H * W
    x = x_nchw.reshape(B, C, HW).astype(jnp.float32)
    wf, bf, wg, bg, wh, bh, wo, bo = params

    mean = jnp.mean(x, axis=-1, keepdims=True)
    var = jnp.sum((x - mean) ** 2, axis=-1, keepdims=True) / max(HW - 1, 1)
    xn = (x - mean) / jnp.sqrt(var + EPS)

    f = jnp.einsum("oc,bcp->bop", wf, xn) + bf[None]
    g = jnp.einsum("oc,bcp->bop", wg, xn) + bg[None]
    h = jnp.einsum("oc,bcp->bop", wh, x) + bh[None]

    energy = jnp.einsum("bcp,bcq->bpq", f, g)
    attn = jax.nn.softmax(energy, axis=-1)
    out = jnp.einsum("bcq,bpq->bcp", h, attn)
    y = jnp.einsum("oc,bcp->bop", wo, out) + bo[None] + x
    return y.reshape(B, C, H, W)


def init_params(key, C):
    ks = jax.random.split(key, 8)
    scale = 1.0 / jnp.sqrt(C)
    wf = jax.random.uniform(ks[0], (C, C), jnp.float32, -scale, scale)
    bf = jax.random.uniform(ks[1], (C, 1), jnp.float32, -scale, scale)
    wg = jax.random.uniform(ks[2], (C, C), jnp.float32, -scale, scale)
    bg = jax.random.uniform(ks[3], (C, 1), jnp.float32, -scale, scale)
    wh = jax.random.uniform(ks[4], (C, C), jnp.float32, -scale, scale)
    bh = jax.random.uniform(ks[5], (C, 1), jnp.float32, -scale, scale)
    wo = jax.random.uniform(ks[6], (C, C), jnp.float32, -scale, scale)
    bo = jax.random.uniform(ks[7], (C, 1), jnp.float32, -scale, scale)
    return (wf, bf, wg, bg, wh, bh, wo, bo)


if __name__ == "__main__":
    key = jax.random.PRNGKey(0)
    k_x, k_p, k_x2 = jax.random.split(key, 3)

    B, C, H, W = 2, 4, 16, 16
    x = jax.random.normal(k_x, (B, C, H, W), jnp.float32)
    params = init_params(k_p, C)

    # Test 1: HW=256, tq=tk=128 -> exercises the multi-key-tile online softmax.
    y = jax.block_until_ready(cam_forward(x, params, tq=128, tk=128))
    y_ref = cam_reference(x, params)
    assert y.shape == (B, C, H, W)
    assert bool(jnp.all(jnp.isfinite(y)))
    # bf16 MXU inputs (f32 accumulation) throughout -> slightly loose tolerance.
    assert bool(jnp.allclose(y, y_ref, rtol=2e-2, atol=2e-2))

    # Test 2: 14x14 (HW=196 -> padded to 256) exercises key masking + padded queries.
    H2, W2 = 14, 14
    x2 = jax.random.normal(k_x2, (B, C, H2, W2), jnp.float32)
    y2 = jax.block_until_ready(cam_forward(x2, params, tq=128, tk=128))
    y2_ref = cam_reference(x2, params)
    assert y2.shape == (B, C, H2, W2)
    assert bool(jnp.all(jnp.isfinite(y2)))
    assert bool(jnp.allclose(y2, y2_ref, rtol=2e-2, atol=2e-2))

    print("KERNEL_OK")
</pallas_src>

<mosaic_0001>
module attributes {stable_mosaic.version = 11 : i64} {
  func.func @cam_proj_kernel(%arg0: i32, %arg1: i32, %arg2: memref<1x4x256xf32, #tpu.memory_space<vmem>>, %arg3: memref<1x8x4xbf16, #tpu.memory_space<vmem>>, %arg4: memref<1x8x1xf32, #tpu.memory_space<vmem>>, %arg5: memref<4x4xbf16, #tpu.memory_space<vmem>>, %arg6: memref<4x1xf32, #tpu.memory_space<vmem>>, %arg7: memref<1x4x256xbf16, #tpu.memory_space<vmem>>, %arg8: memref<1x4x256xbf16, #tpu.memory_space<vmem>>, %arg9: memref<1x4x256xbf16, #tpu.memory_space<vmem>>) attributes {dimension_semantics = [#tpu.dimension_semantics<parallel>, #tpu.dimension_semantics<parallel>], iteration_bounds = array<i64: 2, 1>, scalar_prefetch = 0 : i64, scratch_operands = 0 : i64, tpu.core_type = #tpu.core_type<tc>, window_params = [{transform_indices = @transform_0, window_bounds = array<i64: 1, 4, 256>}, {transform_indices = @transform_1, window_bounds = array<i64: 1, 8, 4>}, {transform_indices = @transform_2, window_bounds = array<i64: 1, 8, 1>}, {pipeline_mode = #tpu.pipeline_mode<synchronous>, transform_indices = @transform_3, window_bounds = array<i64: 4, 4>}, {pipeline_mode = #tpu.pipeline_mode<synchronous>, transform_indices = @transform_4, window_bounds = array<i64: 4, 1>}, {transform_indices = @transform_5, window_bounds = array<i64: 1, 4, 256>}, {transform_indices = @transform_6, window_bounds = array<i64: 1, 4, 256>}, {transform_indices = @transform_7, window_bounds = array<i64: 1, 4, 256>}]} {
    %c0 = arith.constant 0 : index
    %c0_0 = arith.constant 0 : index
    %c0_1 = arith.constant 0 : index
    %0 = vector.load %arg2[%c0, %c0_0, %c0_1] : memref<1x4x256xf32, #tpu.memory_space<vmem>>, vector<1x4x256xf32>
    %1 = vector.shape_cast %0 : vector<1x4x256xf32> to vector<4x256xf32>
    %2 = arith.truncf %1 : vector<4x256xf32> to vector<4x256xbf16>
    %c0_2 = arith.constant 0 : index
    %c0_3 = arith.constant 0 : index
    %c0_4 = arith.constant 0 : index
    %3 = vector.load %arg3[%c0_2, %c0_3, %c0_4] : memref<1x8x4xbf16, #tpu.memory_space<vmem>>, vector<1x8x4xbf16>
    %4 = vector.shape_cast %3 : vector<1x8x4xbf16> to vector<8x4xbf16>
    %cst = arith.constant dense<0.000000e+00> : vector<8x256xf32>
    %5 = tpu.matmul %4, %2, %cst {dimension_numbers = #tpu.dot_dimension_numbers<[1], [0], [0], [1], [0, 0, 1, 1], [], []>} : vector<8x4xbf16>, vector<4x256xbf16>, vector<8x256xf32> -> vector<8x256xf32>
    %c0_5 = arith.constant 0 : index
    %c0_6 = arith.constant 0 : index
    %c0_7 = arith.constant 0 : index
    %6 = vector.load %arg4[%c0_5, %c0_6, %c0_7] : memref<1x8x1xf32, #tpu.memory_space<vmem>>, vector<1x8x1xf32>
    %7 = vector.shape_cast %6 : vector<1x8x1xf32> to vector<8x1xf32>
    %8 = vector.broadcast %7 : vector<8x1xf32> to vector<8x256xf32>
    %9 = arith.addf %5, %8 : vector<8x256xf32>
    %c0_8 = arith.constant 0 : index
    %c0_9 = arith.constant 0 : index
    %10 = vector.load %arg5[%c0_8, %c0_9] : memref<4x4xbf16, #tpu.memory_space<vmem>>, vector<4x4xbf16>
    %cst_10 = arith.constant dense<0.000000e+00> : vector<4x256xf32>
    %11 = tpu.matmul %10, %2, %cst_10 {dimension_numbers = #tpu.dot_dimension_numbers<[1], [0], [0], [1], [0, 0, 1, 1], [], []>} : vector<4x4xbf16>, vector<4x256xbf16>, vector<4x256xf32> -> vector<4x256xf32>
    %c0_11 = arith.constant 0 : index
    %c0_12 = arith.constant 0 : index
    %12 = vector.load %arg6[%c0_11, %c0_12] : memref<4x1xf32, #tpu.memory_space<vmem>>, vector<4x1xf32>
    %13 = vector.broadcast %12 : vector<4x1xf32> to vector<4x256xf32>
    %14 = arith.addf %11, %13 : vector<4x256xf32>
    %15 = vector.extract_strided_slice %9 {offsets = [0, 0], sizes = [4, 256], strides = [1, 1]} : vector<8x256xf32> to vector<4x256xf32>
    %16 = arith.truncf %15 : vector<4x256xf32> to vector<4x256xbf16>
    %c0_13 = arith.constant 0 : index
    %c0_14 = arith.constant 0 : index
    %c0_15 = arith.constant 0 : index
    %17 = vector.load %arg7[%c0_13, %c0_14, %c0_15] : memref<1x4x256xbf16, #tpu.memory_space<vmem>>, vector<1x4x256xbf16>
    %18 = vector.shape_cast %17 : vector<1x4x256xbf16> to vector<4x256xbf16>
    %19 = vector.shape_cast %16 : vector<4x256xbf16> to vector<1x4x256xbf16>
    tpu.vector_store %arg7[%c0_13, %c0_14, %c0_15], %19 {strides = array<i32>} : memref<1x4x256xbf16, #tpu.memory_space<vmem>>, vector<1x4x256xbf16>,
    %20 = vector.extract_strided_slice %9 {offsets = [4, 0], sizes = [4, 256], strides = [1, 1]} : vector<8x256xf32> to vector<4x256xf32>
    %21 = arith.truncf %20 : vector<4x256xf32> to vector<4x256xbf16>
    %c0_16 = arith.constant 0 : index
    %c0_17 = arith.constant 0 : index
    %c0_18 = arith.constant 0 : index
    %22 = vector.load %arg8[%c0_16, %c0_17, %c0_18] : memref<1x4x256xbf16, #tpu.memory_space<vmem>>, vector<1x4x256xbf16>
    %23 = vector.shape_cast %22 : vector<1x4x256xbf16> to vector<4x256xbf16>
    %24 = vector.shape_cast %21 : vector<4x256xbf16> to vector<1x4x256xbf16>
    tpu.vector_store %arg8[%c0_16, %c0_17, %c0_18], %24 {strides = array<i32>} : memref<1x4x256xbf16, #tpu.memory_space<vmem>>, vector<1x4x256xbf16>,
    %25 = arith.truncf %14 : vector<4x256xf32> to vector<4x256xbf16>
    %c0_19 = arith.constant 0 : index
    %c0_20 = arith.constant 0 : index
    %c0_21 = arith.constant 0 : index
    %26 = vector.load %arg9[%c0_19, %c0_20, %c0_21] : memref<1x4x256xbf16, #tpu.memory_space<vmem>>, vector<1x4x256xbf16>
    %27 = vector.shape_cast %26 : vector<1x4x256xbf16> to vector<4x256xbf16>
    %28 = vector.shape_cast %25 : vector<4x256xbf16> to vector<1x4x256xbf16>
    tpu.vector_store %arg9[%c0_19, %c0_20, %c0_21], %28 {strides = array<i32>} : memref<1x4x256xbf16, #tpu.memory_space<vmem>>, vector<1x4x256xbf16>,
    return
  }
  func.func @transform_0(%arg0: i32, %arg1: i32) -> (i32, i32, i32) {
    %c0_i32 = arith.constant 0 : i32
    %c0_i32_0 = arith.constant 0 : i32
    return %arg0, %c0_i32, %arg1 : i32, i32, i32
  }
  func.func @transform_1(%arg0: i32, %arg1: i32) -> (i32, i32, i32) {
    %c0_i32 = arith.constant 0 : i32
    %c0_i32_0 = arith.constant 0 : i32
    %c0_i32_1 = arith.constant 0 : i32
    return %arg0, %c0_i32, %c0_i32_0 : i32, i32, i32
  }
  func.func @transform_2(%arg0: i32, %arg1: i32) -> (i32, i32, i32) {
    %c0_i32 = arith.constant 0 : i32
    %c0_i32_0 = arith.constant 0 : i32
    %c0_i32_1 = arith.constant 0 : i32
    return %arg0, %c0_i32, %c0_i32_0 : i32, i32, i32
  }
  func.func @transform_3(%arg0: i32, %arg1: i32) -> (i32, i32) {
    %c0_i32 = arith.constant 0 : i32
    %c0_i32_0 = arith.constant 0 : i32
    %c0_i32_1 = arith.constant 0 : i32
    return %c0_i32, %c0_i32_0 : i32, i32
  }
  func.func @transform_4(%arg0: i32, %arg1: i32) -> (i32, i32) {
    %c0_i32 = arith.constant 0 : i32
    %c0_i32_0 = arith.constant 0 : i32
    %c0_i32_1 = arith.constant 0 : i32
    return %c0_i32, %c0_i32_0 : i32, i32
  }
  func.func @transform_5(%arg0: i32, %arg1: i32) -> (i32, i32, i32) {
    %c0_i32 = arith.constant 0 : i32
    %c0_i32_0 = arith.constant 0 : i32
    return %arg0, %c0_i32, %arg1 : i32, i32, i32
  }
  func.func @transform_6(%arg0: i32, %arg1: i32) -> (i32, i32, i32) {
    %c0_i32 = arith.constant 0 : i32
    %c0_i32_0 = arith.constant 0 : i32
    return %arg0, %c0_i32, %arg1 : i32, i32, i32
  }
  func.func @transform_7(%arg0: i32, %arg1: i32) -> (i32, i32, i32) {
    %c0_i32 = arith.constant 0 : i32
    %c0_i32_0 = arith.constant 0 : i32
    return %arg0, %c0_i32, %arg1 : i32, i32, i32
  }
}

</mosaic_0001>

<bundles_post_ra>
// kernel: tpu_custom_call.1
= control target key start
LH: loop header
LB: loop body
LE: loop exit
PB: predicated region body
PF: predicated region fallthrough
CT: control target
= control target key end

     0   :  { %s1248_s0 = inlined_call_operand.vmem [shape: f32[2,4,256], index: 0, kind: input, shape index: {}]   ;;  %s1249_s1 = inlined_call_operand.vmem [shape: bf16[2,8,4], index: 1, kind: input, shape index: {}]   ;;  %s1250_s2 = inlined_call_operand.vmem [shape: f32[2,8,1], index: 2, kind: input, shape index: {}]   ;;  %s1251_s3 = inlined_call_operand.vmem [shape: bf16[4,4], index: 3, kind: input, shape index: {}]   ;;  %s1252_s4 = inlined_call_operand.vmem [shape: f32[4,1], index: 4, kind: input, shape index: {}]   ;;  %s1253_s5 = inlined_call_operand.hbm [shape: bf16[2,4,256], index: 5, kind: output, shape index: {0}]   ;;  %s1254_s6 = inlined_call_operand.hbm [shape: bf16[2,4,256], index: 6, kind: output, shape index: {1}]   ;;  %s1255_s7 = inlined_call_operand.hbm [shape: bf16[2,4,256], index: 7, kind: output, shape index: {2}]  }
   0x1   :  { %1259 = sst [smem:[#allocation9_spill]] %s1248_s0 }
   0x2   :  { %1260 = sst [smem:[#allocation10_spill]] %s1249_s1 }
   0x3   :  { %13 = vsyncpa [#allocation3], 0 }
   0x4   :  { %15 = vsyncpa [#allocation3 + $0x1], 0 }
   0x5   :  { %16 = vsyncpa [#allocation5], 0 }
   0x6   :  { %18 = vsyncpa [#allocation5 + $0x1], 0  ;;  %s1029_s24 = smov 0   ;;  %s1031_s25 = smov 0  }
   0x7   :  { %s1033_s26 = smov 0   ;;  %s1035_s27 = smov 0  }
   0x8   :  { %s1037_s28 = smov 0   ;;  %s1039_s29 = smov 0  }
   0x9 LB: > { %s1257_s30 = sadd.s32 4294967295, %s982_s29   ;;  %s1256_s8 = sadd.s32 4294967294, %s982_s29   ;;  %s982_s29 = sphi %s1039_s29, %s24_s29   ;;  %s978_s28 = sphi %s1037_s28, %s1272_s28   ;;  %s974_s27 = sphi %s1035_s27, %s1271_s27   ;;  %s970_s26 = sphi %s1033_s26, %s1270_s26   ;;  %s966_s25 = sphi %s1031_s25, %s1269_s25   ;;  %s962_s24 = sphi %s1029_s24, %s1268_s24  }
   0xa   : > { %s36_s9 = sadd.s32 1, %s978_s28  ;;  %s167_s10 = sadd.s32 1, %s970_s26 }
   0xb   : > { %p38_p0 = scmp.ge.s32.totalorder %s36_s9, 2  ;;  %p177_p1 = scmp.ne.s32.totalorder %s970_s26, %s966_s25 }
   0xc   : > { %p178_p2 = scmp.eq.s32.totalorder %s1257_s30, 1  ;;  %p183_p3 = scmp.ne.s32.totalorder %s966_s25, %s962_s24 }
   0xd   : > { %s1274_s9 = smov (%p38_p0, %s36_s9), 0  ;;  %p184_p5 = scmp.eq.s32.totalorder %s1256_s8, 1 }
   0xe   : > { %p1071_p4 = por %p178_p2, %p177_p1  ;;  %s162_s12 = ssub.s32 %s978_s28, %s1274_s9 }
   0xf   : > { %p744_p6 = scmp.ge.s32.totalorder %s982_s29, 1  ;;  %p165_p7 = scmp.eq.s32.totalorder %s162_s12, 0 }
  0x10   : > { %p1080_p8 = por %p184_p5, %p183_p3  ;;  %p291_p9 = scmp.lt.s32.totalorder %s982_s29, 3 }
  0x11   : > { %s1086_s14 = scalar_select %p165_p7, %s970_s26, %s167_s10  }
  0x12   : > { %p292_p10 = pnand %p744_p6, %p291_p9 }
  0x13   : > { %p346_p11 = scmp.lt.s32.totalorder (!%p292_p10), %s974_s27, 1  ;;  %v984_v0 = vmov (!%p292_p10), 0   ;;  %s1263_s0 = sld [smem:[#allocation9_spill]] (!%p292_p10)  ;;  %vm384_vm0 = vcmask (!%p292_p10), 1041408   ;;  %v433_v7 = vld [vmem:[%s1252_s4] sm:$0xf] (!%p292_p10)  ;;  %v491_v13 = vlaneseq (!%p292_p10) }
  0x14   : > { %295 = sbr.rel (%p292_p10) target bundleno = 317 (0x13d), region = 40  ;;  %423 = vmatprep.mubr.bf16.mxu0 (!%p292_p10), %v984_v0  ;;  %474 = vmatprep.mubr.bf16.mxu1 (!%p292_p10), %v984_v0  ;;  %s1264_s1 = sld [smem:[#allocation10_spill]] (!%p292_p10)  ;;  %vm380_vm1 = vcmask (!%p292_p10), 31744   ;;  %v432_v9 = vld [vmem:[%s1251_s3] sm:$0x3] (!%p292_p10) }
  0x15   : > { %842 = vset.pattern.permute.xlu0 (!%p292_p10), %v984_v0  ;;  %v985_v11 = vmov (!%p292_p10), 1983009808   ;;  %s328_s30 = sand.u32 (!%p292_p10), 1, %s966_s25   ;;  %v492_v16 = vshrl.u32 (!%p292_p10), %v491_v13, 7  ;;  %s1265_s21 = sadd.s32 (!%p292_p10), 4294967295, %s982_s29  }
  0x16   : > { %v489_v12 = vunpack.c.l.s4 (!%p292_p10), %v985_v11  ;;  %s1108_s18 = sshll.u32 (!%p292_p10), %s328_s30, 2  ;;  %s1116_s22 = sand.u32 (!%p292_p10), 1, %s1265_s21  }
  0x17   : > { %s1258_s12 = scalar_lea.vmem (!%p292_p10), [#allocation4], %s1108_s18  ;;  %s515_s21 = scalar_lea.sflag (!%p292_p10), [#allocation3], %s328_s30 }
  0x18   : > { %v490_v15 = vunpack.c.0.s8 (!%p292_p10), %v489_v12  ;;  %s1129_s17 = sshll.u32 (!%p292_p10), %s1258_s12, 4  ;;  %s1164_s17 = int_to_ptr.vmem [resolvable:$true] %s1129_s17 }
  0x1a   : > { %v493_v24 = vsub.s32 (!%p292_p10), %v490_v15, %v492_v16 }
  0x1b   : > { %s347_s15 = scalar_select %p346_p11, %s974_s27, 1 }
  0x1d   : > { %s771_s16 = sshll.u32 %s347_s15, 3  ;;  %s750_s20 = sshll.u32 %s347_s15, 2 }
  0x1e   : > { %s353_s19 = scalar_lea.vmem %s1263_s0, %s771_s16  ;;  %s362_s23 = scalar_lea.vmem %s1250_s2, %s771_s16 }
  0x1f   : > { %v367_v1 = vld [vmem:[%s353_s19] sm:$0xff]  ;;  %s358_s8 = scalar_lea.vmem %s1264_s1, %s750_s20  ;;  %s330_s19 = scalar_lea.vmem [#allocation2], %s1108_s18 }
  0x20   : > { %v369_v2 = vcombine.high %v367_v1, %v367_v1  ;;  %v371_v3 = vpack.c.bf16 %v367_v1, %v367_v1  ;;  %v374_v4 = vld [vmem:[%s362_s23] sm:$0xff]  ;;  %s541_s20 = sshll.u32 %s330_s19, 4  ;;  %s344_s15 = scalar_lea.vmem [#allocation6], %s1108_s18  ;;  %s1124_s20 = int_to_ptr.vmem [resolvable:$true] %s541_s20 }
  0x21   : > { %377 = vperm.xlu0 %842, %v374_v4   ;;  %v373_v8 = vld [vmem:[%s358_s8] sm:$0xf]  ;;  %s1111_s8 = sshll.u32 %s974_s27, 6  ;;  %s1132_s16 = sshll.u32 %s344_s15, 4  ;;  %s1173_s16 = int_to_ptr.vmem [resolvable:$true] %s1132_s16 }
  0x22   : > { %v372_v5 = vpack.c.bf16 %v369_v2, %v369_v2  ;;  %v386_v6 = vsel %vm384_vm0, %v371_v3, 0  ;;  %s1122_s10 = scalar_lea.hbm %s1253_s5, %s1111_s8  ;;  %s844_s27 = scalar_lea.vmem %s1124_s20, 64 }
  0x23   : > { %p845_p12 = scmp.ne.s32.totalorder %s1124_s20, %s844_s27  ;;  %s986_s23 = smov [#allocation2]  }
  0x24   : > { %752 = vmatprep.subr.msk.bf16.mxu0 %vm384_vm0, %v372_v5  ;;  %754 = vmatprep.subr.msk.bf16.mxu1 %vm384_vm0, %v372_v5  ;;  %s848_s0 = sshll.u32 %s986_s23, 4  ;;  %s849_s0 = int_to_ptr.vmem [resolvable:$false] %s848_s0 }
  0x25   : > { %392 = vmatpush1.bf16.msra.mxu0 %v386_v6  ;;  %443 = vmatpush1.bf16.msra.mxu1 %v386_v6  ;;  %p846_p13 = pnand %p845_p12, %p1071_p4  ;;  %s850_s1 = scalar_lea.vmem %s849_s0, 128 }
  0x26   : > { %436 = vperm.xlu0 %842, %v433_v7   ;;  %p851_p1 = scmp.lt.s32.totalorder %s1124_s20, %s849_s0  ;;  %p852_p2 = scmp.lt.s32.totalorder %s850_s1, %s844_s27 }
  0x27   : > { %p847_p0 = pneg %p846_p13 }
  0x28   : > { %753 = vmatmul.mubr.msk.bf16.vlgmr.msra.gmra.mrb[0].mxu0 %vm380_vm1, %v373_v8  ;;  %755 = vmatmul.mubr.msk.bf16.vlgmr.msra.gmra.mrb[0].mxu1 %vm380_vm1, %v432_v9  ;;  %p853_p3 = por %p852_p2, %p851_p1 }
  0x2a   : > { %p854_p5 = pnand %p853_p3, %p847_p0 }
  0xa0   : > { %v378_v10 = vpop.permute.xlu0 %377 }
  0xa5   : > { %v437_v14 = vpop.permute.xlu0 %436 }
  0xfb   : > { %v425_v17 = vpop.f32.mrb[0].mxu0  ;;  %v476_v18 = vpop.f32.mrb[0].mxu1 }
  0xfc   : > { %v426_v19 = vadd.f32 %v425_v17, %v378_v10  ;;  %v477_v20 = vadd.f32 %v476_v18, %v437_v14  ;;  %v427_v21 = vpop.f32.mrb[1].mxu0  ;;  %v478_v22 = vpop.f32.mrb[1].mxu1 }
  0xfd   : > { %v428_v23 = vadd.f32 %v427_v21, %v378_v10  ;;  %v479_v25 = vadd.f32 %v478_v22, %v437_v14  ;;  %v429_v26 = vpop.f32.mrb[2].mxu0  ;;  %v480_v27 = vpop.f32.mrb[2].mxu1 }
  0xfe   : > { %v430_v28 = vpop.f32.mrb[3].mxu0  ;;  %v481_v29 = vpop.f32.mrb[3].mxu1 }
  0xff   : > { %v756_v30 = vpack.c.bf16 %v428_v23, %v426_v19  ;;  %v758_v31 = vpack.c.bf16 %v479_v25, %v477_v20 }
 0x101   : > { %v494_v32 = vrot.slane %v756_v30, %v493_v24  ;;  %759 = vst.sshfl [vmem:[%s344_s15] sm:$0x33 pattern:$0x76325410] %v758_v31  ;;  %757 = vst.sshfl [vmem:[%s330_s19] sm:$0x33 pattern:$0x76325410] %v756_v30 }
 0x102   : > { %857 = shalt.err (!%p854_p5)
}
 0x103   : > { %s858_s30 = scalar_lea.hbm %s1122_s10, 64  ;;  %s862_s23 = scalar_lea.hbm %s1253_s5, 128 }
 0x104   : > { %p859_p6 = scmp.ne.s32.totalorder %s1122_s10, %s858_s30  ;;  %p863_p10 = scmp.lt.u32.totalorder %s1122_s10, %s1253_s5 }
 0x105   : > { %p864_p11 = scmp.lt.u32.totalorder %s862_s23, %s858_s30  ;;  %p866_p13 = scmp.lt.u32.totalorder %s858_s30, %s1122_s10 }
 0x106   : > { %p860_p7 = pnand %p859_p6, %p1071_p4 }
 0x107   : > { %p865_p12 = por %p864_p11, %p863_p10 }
 0x108   : > { %p861_p9 = pneg %p860_p7 }
 0x109   : > { %p867_p0 = por %p866_p13, %p865_p12 }
 0x10b   : > { %p868_p1 = pnand %p867_p0, %p861_p9 }
 0x10d   : > { %871 = shalt.err (!%p868_p1)
}
 0x10e   : > { %775 = dma.vmem_to_hbm [thread:$0]  (%p1071_p4), %s1124_s20, 64, %s1122_s10, %s515_s21   ;;  %v497_v33 = vcombine.high %v494_v32, %v494_v32 }
 0x10f   : > { %s1161_s27 = scalar_lea.hbm %s1254_s6, %s1111_s8  ;;  %s1170_s15 = scalar_lea.hbm %s1255_s7, %s1111_s8 }
 0x110   : > { %s1266_s23 = scalar_lea.vmem [#allocation4], %s1108_s18  ;;  %s520_s20 = scalar_lea.sflag [#allocation5], %s1116_s22 }
 0x111   : > { %499 = vst [vmem:[%s1266_s23] sm:$0xf] %v497_v33  ;;  %s872_s10 = scalar_lea.vmem %s1164_s17, 64  ;;  %s987_s21 = smov [#allocation4]  }
 0x112   : > { %p873_p2 = scmp.ne.s32.totalorder %s1164_s17, %s872_s10  ;;  %s876_s0 = sshll.u32 %s987_s21, 4  ;;  %s877_s0 = int_to_ptr.vmem [resolvable:$false] %s876_s0 }
 0x113   : > { %s878_s1 = scalar_lea.vmem %s877_s0, 128  ;;  %p879_p6 = scmp.lt.s32.totalorder %s1164_s17, %s877_s0 }
 0x114   : > { %p874_p3 = pnand %p873_p2, %p1071_p4  ;;  %p880_p7 = scmp.lt.s32.totalorder %s878_s1, %s872_s10 }
 0x116   : > { %p875_p5 = pneg %p874_p3  ;;  %p881_p9 = por %p880_p7, %p879_p6 }
 0x118   : > { %p882_p10 = pnand %p881_p9, %p875_p5 }
 0x11a   : > { %885 = shalt.err (!%p882_p10)
}
 0x11b   : > { %s886_s18 = scalar_lea.hbm %s1161_s27, 64  ;;  %s890_s30 = scalar_lea.hbm %s1254_s6, 128 }
 0x11c   : > { %p887_p11 = scmp.ne.s32.totalorder %s1161_s27, %s886_s18  ;;  %p891_p0 = scmp.lt.u32.totalorder %s1161_s27, %s1254_s6 }
 0x11d   : > { %p892_p1 = scmp.lt.u32.totalorder %s890_s30, %s886_s18  ;;  %p894_p3 = scmp.lt.u32.totalorder %s886_s18, %s1161_s27 }
 0x11e   : > { %p888_p12 = pnand %p887_p11, %p1071_p4 }
 0x11f   : > { %p893_p2 = por %p892_p1, %p891_p0 }
 0x120   : > { %p889_p13 = pneg %p888_p12 }
 0x121   : > { %p895_p5 = por %p894_p3, %p893_p2 }
 0x123   : > { %p896_p6 = pnand %p895_p5, %p889_p13 }
 0x125   : > { %899 = shalt.err (!%p896_p6)
}
 0x126   : > { %776 = dma.vmem_to_hbm [thread:$0]  (%p1071_p4), %s1164_s17, 64, %s1161_s27, %s520_s20  }
 0x127   : > { %s900_s10 = scalar_lea.vmem %s1173_s16, 64  ;;  %s988_s21 = smov [#allocation6]  }
 0x128   : > { %p901_p7 = scmp.ne.s32.totalorder %s1173_s16, %s900_s10  ;;  %s904_s0 = sshll.u32 %s988_s21, 4  ;;  %s905_s0 = int_to_ptr.vmem [resolvable:$false] %s904_s0 }
 0x129   : > { %s906_s1 = scalar_lea.vmem %s905_s0, 128  ;;  %p907_p11 = scmp.lt.s32.totalorder %s1173_s16, %s905_s0 }
 0x12a   : > { %p902_p9 = pnand %p901_p7, %p1071_p4  ;;  %p908_p12 = scmp.lt.s32.totalorder %s906_s1, %s900_s10 }
 0x12c   : > { %p903_p10 = pneg %p902_p9  ;;  %p909_p13 = por %p908_p12, %p907_p11 }
 0x12e   : > { %p910_p0 = pnand %p909_p13, %p903_p10 }
 0x130   : > { %913 = shalt.err (!%p910_p0)
}
 0x131   : > { %s914_s17 = scalar_lea.hbm %s1170_s15, 64  ;;  %s918_s8 = scalar_lea.hbm %s1255_s7, 128 }
 0x132   : > { %p915_p1 = scmp.ne.s32.totalorder %s1170_s15, %s914_s17  ;;  %p919_p5 = scmp.lt.u32.totalorder %s1170_s15, %s1255_s7 }
 0x133   : > { %p920_p6 = scmp.lt.u32.totalorder %s918_s8, %s914_s17  ;;  %p922_p9 = scmp.lt.u32.totalorder %s914_s17, %s1170_s15 }
 0x134   : > { %p916_p2 = pnand %p915_p1, %p1071_p4 }
 0x135   : > { %p921_p7 = por %p920_p6, %p919_p5 }
 0x136   : > { %p917_p3 = pneg %p916_p2 }
 0x137   : > { %p923_p10 = por %p922_p9, %p921_p7 }
 0x139   : > { %p924_p11 = pnand %p923_p10, %p917_p3 }
 0x13b   : > { %927 = shalt.err (!%p924_p11)
}
 0x13c   : > { %777 = dma.vmem_to_hbm [thread:$0]  (%p1071_p4), %s1173_s16, 64, %s1170_s15, %s520_s20  }
 0x13d PF: > { %p791_p12 = scmp.ge.s32.totalorder %s982_s29, 2  ;;  %s585_s19 = sand.u32 1, %s962_s24  }
 0x13e   : > { %s586_s23 = scalar_lea.sflag [#allocation3], %s585_s19 }
 0x13f   : > { %p782_p13 = pnand %p791_p12, %p1080_p8 }
 0x141   : > { %953 = dma.done.wait (!%p782_p13), %s586_s23, 64  }
 0x142   : > { %955 = vsyncadd (!%p782_p13), %s586_s23, 4294967232  ;;  %s1267_s10 = sadd.s32 4294967294, %s982_s29  }
 0x143   : > { %s594_s21 = sand.u32 1, %s1267_s10  }
 0x144   : > { %s595_s11 = scalar_lea.sflag [#allocation5], %s594_s21 }
 0x145   : > { %957 = dma.done.wait (!%p782_p13), %s595_s11, 128  }
 0x146   : > { %959 = vsyncadd (!%p782_p13), %s595_s11, 4294967168  ;;  %s24_s29 = sadd.s32 1, %s982_s29   ;;  %s1268_s24 = smov %s966_s25 }
 0x147   : > { %p21_p4 = scmp.ge.s32.totalorder %s24_s29, 4   ;;  %s1269_s25 = smov %s970_s26 }
 0x148   : > { %s1270_s26 = smov %s1086_s14  ;;  %s1271_s27 = smov %s978_s28 }
 0x149   : > { %s1272_s28 = smov %s1274_s9  ;;  %23 = sbr.rel (!%p21_p4) target bundleno = 9 (0x9), region = 113 }
 0x150   :  { %609 = vsyncpa [#allocation3], 1 }
 0x151   :  { %611 = vsyncpa [#allocation3 + $0x1], 1 }
 0x152   :  { %612 = vsyncpa [#allocation5], 1 }
 0x153   :  { %614 = vsyncpa [#allocation5 + $0x1], 1 }

</bundles_post_ra>
